<compile_context>
chip_gen: v7x
topology: tpu7x:2x2x1
jax: 0.10.0
libtpu: 0.0.40
codegen_flags: <defaults>
</compile_context>

<pallas_src>
import jax
import jax.numpy as jnp
from jax.experimental import pallas as pl
from jax.experimental.pallas import tpu as pltpu


def _round_up(x, m):
    return ((x + m - 1) // m) * m


# ---------------------------------------------------------------------------
# Pallas kernel: full VAE + classifier forward chain for one batch tile.
# The tile is processed as `splits` sub-tiles inside one basic block so MXU
# work of one sub-tile overlaps EUP/VPU work of the other (different VLIW
# slots).
# ---------------------------------------------------------------------------
def make_vae_clf_kernel(latent_pad, sub_rows, splits):
    def vae_clf_kernel(
        x_ref, eps_ref,
        w1_ref, b1_ref,            # encoder fc1
        wmulv_ref, bmulv_ref,      # fused encoder mu|logvar head
        w3_ref, b3_ref,            # decoder fc3
        w4_ref, b4_ref,            # decoder fc4 (reconstruction)
        wc1_ref, bc1_ref,          # classifier fc1
        wc2_ref, bc2_ref,          # classifier fc2 (logits)
        out_ref,
    ):
        for s in range(splits):                     # static unroll: same BB
            rows = pl.ds(s * sub_rows, sub_rows)    # static start/size

            # ---- VAE encoder (bf16 matmul, f32 accumulation) ----
            h1 = jnp.dot(x_ref[rows, :], w1_ref[...],
                         preferred_element_type=jnp.float32) + b1_ref[...]
            h1 = jnp.maximum(h1, 0.0)

            # ---- fused mu|logvar head: one 2*latent_pad-wide matmul ----
            mulv = jnp.dot(h1.astype(jnp.bfloat16), wmulv_ref[...],
                           preferred_element_type=jnp.float32) + bmulv_ref[...]
            mu = mulv[:, :latent_pad]
            logvar = mulv[:, latent_pad:]

            # ---- reparameterization: z = mu + eps * exp(0.5*logvar) (f32) ----
            # Padded latent columns: logvar==0 -> std==1, but eps is zero-padded
            # there AND w3's padded rows are zero, so they contribute nothing.
            std = jnp.exp(0.5 * logvar)
            z = mu + eps_ref[rows, :] * std

            # ---- VAE decoder ----
            h3 = jnp.dot(z.astype(jnp.bfloat16), w3_ref[...],
                         preferred_element_type=jnp.float32) + b3_ref[...]
            h3 = jnp.maximum(h3, 0.0)
            recon_logits = jnp.dot(h3.astype(jnp.bfloat16), w4_ref[...],
                                   preferred_element_type=jnp.float32) + b4_ref[...]
            # sigmoid with the divide on the EUP approx path
            recon = pl.reciprocal(1.0 + jnp.exp(-recon_logits), approx=True)

            # ---- classifier on reconstructed image ----
            c1 = jnp.dot(recon.astype(jnp.bfloat16), wc1_ref[...],
                         preferred_element_type=jnp.float32) + bc1_ref[...]
            c1 = jnp.maximum(c1, 0.0)
            logits = jnp.dot(c1.astype(jnp.bfloat16), wc2_ref[...],
                             preferred_element_type=jnp.float32) + bc2_ref[...]

            out_ref[rows, :] = logits               # lane-dense 128-wide store

    return vae_clf_kernel


# ---------------------------------------------------------------------------
# Wrapper: adaptive batch tile, grid over batch, weights VMEM-resident.
# ---------------------------------------------------------------------------
def vae_classifier_forward(x_nchw, eps, packed, *, num_classes, latent_pad,
                           tile_b=None):
    """x_nchw: (B, C, H, W) f32; eps: (B, latent) f32; packed: padded params."""
    B = x_nchw.shape[0]
    D = x_nchw.shape[1] * x_nchw.shape[2] * x_nchw.shape[3]

    # Adaptive batch tile: no more padding 2 -> 128 rows for tiny batches.
    if tile_b is None:
        tile_b = min(128, _round_up(max(B, 1), 16))
        # If one tile would cover the whole batch and it splits cleanly,
        # use two tiles so v7x's 2 TensorCores both get work.
        if tile_b % 32 == 0 and _round_up(max(B, 1), tile_b) == tile_b:
            tile_b //= 2
    B_pad = _round_up(max(B, 1), tile_b)
    num_tiles = B_pad // tile_b

    # Interleave two sub-tiles inside the kernel when the tile is big enough
    # (each sub-tile keeps a 16-row bf16 sublane granule).
    splits = 2 if tile_b % 32 == 0 else 1
    sub_rows = tile_b // splits

    # glue reshapes / pads in plain JAX; matmul inputs go in as bf16
    x_flat = x_nchw.reshape(B, D).astype(jnp.bfloat16)
    if B_pad != B:
        x_flat = jnp.pad(x_flat, ((0, B_pad - B), (0, 0)))
    # eps MUST be zero-padded in the padded latent columns (see kernel note).
    eps_pad = jnp.pad(eps.astype(jnp.float32),
                      ((0, B_pad - B), (0, latent_pad - eps.shape[1])))

    enc_hidden_pad = packed["w1"].shape[1]
    clf_hidden_pad = packed["wc1"].shape[1]
    num_classes_pad = packed["wc2"].shape[1]

    operands = (
        x_flat, eps_pad,
        packed["w1"], packed["b1"],
        packed["wmulv"], packed["bmulv"],
        packed["w3"], packed["b3"],
        packed["w4"], packed["b4"],
        packed["wc1"], packed["bc1"],
        packed["wc2"], packed["bc2"],
    )

    # Weights/biases: full-array blocks with constant index_map -> fetched once
    # and kept resident in VMEM across the batch grid.
    def full_spec(a):
        return pl.BlockSpec(a.shape, lambda i: (0, 0))

    in_specs = [
        pl.BlockSpec((tile_b, D), lambda i: (i, 0)),            # x tile
        pl.BlockSpec((tile_b, latent_pad), lambda i: (i, 0)),   # eps tile
    ] + [full_spec(a) for a in operands[2:]]

    out_specs = pl.BlockSpec((tile_b, num_classes_pad), lambda i: (i, 0))

    # Advisory cost estimate for XLA's scheduler.
    flops = 2 * B_pad * (
        D * enc_hidden_pad
        + enc_hidden_pad * (2 * latent_pad)
        + latent_pad * enc_hidden_pad
        + enc_hidden_pad * D
        + D * clf_hidden_pad
        + clf_hidden_pad * num_classes_pad
    )
    # exp for reparam (latent_pad) + exp & reciprocal per element of sigmoid (2*D)
    transcendentals = B_pad * (latent_pad + 2 * D)
    bytes_accessed = (sum(int(a.size) * a.dtype.itemsize for a in operands)
                      + B_pad * num_classes_pad * 4)

    # VMEM limit computed from actual footprint (x2 for double-buffering) plus
    # headroom for intermediates / compiler scratch; clamped to v7x's 64 MiB.
    weight_bytes = sum(int(a.size) * a.dtype.itemsize for a in operands[2:])
    act_bytes = (tile_b * D * 2                      # x tile (bf16)
                 + tile_b * latent_pad * 4           # eps tile
                 + tile_b * num_classes_pad * 4)     # output tile
    vmem_limit = 2 * (weight_bytes + act_bytes) + (4 << 20)
    vmem_limit = max(8 << 20, min(vmem_limit, 64 << 20))

    out_padded = pl.pallas_call(
        make_vae_clf_kernel(latent_pad, sub_rows, splits),
        out_shape=jax.ShapeDtypeStruct((B_pad, num_classes_pad), jnp.float32),
        grid=(num_tiles,),
        in_specs=in_specs,
        out_specs=out_specs,
        compiler_params=pltpu.CompilerParams(
            dimension_semantics=("parallel",),        # shard batch tiles across TCs
            vmem_limit_bytes=vmem_limit,
        ),
        cost_estimate=pl.CostEstimate(
            flops=flops,
            transcendentals=transcendentals,
            bytes_accessed=bytes_accessed,
        ),
    )(*operands)

    return out_padded[:B, :num_classes]


# ---------------------------------------------------------------------------
# Deterministic synthetic parameter init (true, unpadded f32 shapes).
# TODO(synk): real VAEClassifier loads vae/clf weights from torch state_dicts;
# here they are synthesized in-script.
# ---------------------------------------------------------------------------
def init_params(key, in_dim, enc_hidden, latent, clf_hidden, num_classes):
    def lin(k, fan_in, fan_out):
        kw, kb = jax.random.split(k)
        scale = 1.0 / jnp.sqrt(fan_in)
        w = jax.random.uniform(kw, (fan_in, fan_out), jnp.float32, -scale, scale)
        b = jax.random.uniform(kb, (1, fan_out), jnp.float32, -scale, scale)
        return w, b

    keys = jax.random.split(key, 7)
    p = {}
    p["w1"], p["b1"] = lin(keys[0], in_dim, enc_hidden)
    p["wmu"], p["bmu"] = lin(keys[1], enc_hidden, latent)
    p["wlv"], p["blv"] = lin(keys[2], enc_hidden, latent)
    p["w3"], p["b3"] = lin(keys[3], latent, enc_hidden)
    p["w4"], p["b4"] = lin(keys[4], enc_hidden, in_dim)
    p["wc1"], p["bc1"] = lin(keys[5], in_dim, clf_hidden)
    p["wc2"], p["bc2"] = lin(keys[6], clf_hidden, num_classes)
    return p


# ---------------------------------------------------------------------------
# One-time packing: zero-pad narrow dims, fuse the mu|logvar heads, cast
# weights to bf16 (biases stay f32: added post-accumulation).
# ---------------------------------------------------------------------------
def prepare_params(p, *, enc_hidden_pad, latent_pad, clf_hidden_pad, num_classes_pad):
    def pad_w(w, rows, cols):
        return jnp.pad(w, ((0, rows - w.shape[0]), (0, cols - w.shape[1])))

    def pad_b(b, cols):
        return jnp.pad(b, ((0, 0), (0, cols - b.shape[1]))).astype(jnp.float32)

    in_dim = p["w1"].shape[0]
    out = {}
    out["w1"] = pad_w(p["w1"], in_dim, enc_hidden_pad).astype(jnp.bfloat16)
    out["b1"] = pad_b(p["b1"], enc_hidden_pad)

    wmu = pad_w(p["wmu"], enc_hidden_pad, latent_pad)
    wlv = pad_w(p["wlv"], enc_hidden_pad, latent_pad)
    out["wmulv"] = jnp.concatenate([wmu, wlv], axis=1).astype(jnp.bfloat16)
    out["bmulv"] = jnp.concatenate([pad_b(p["bmu"], latent_pad),
                                    pad_b(p["blv"], latent_pad)], axis=1)

    out["w3"] = pad_w(p["w3"], latent_pad, enc_hidden_pad).astype(jnp.bfloat16)
    out["b3"] = pad_b(p["b3"], enc_hidden_pad)
    out["w4"] = pad_w(p["w4"], enc_hidden_pad, in_dim).astype(jnp.bfloat16)
    out["b4"] = pad_b(p["b4"], in_dim)

    out["wc1"] = pad_w(p["wc1"], in_dim, clf_hidden_pad).astype(jnp.bfloat16)
    out["bc1"] = pad_b(p["bc1"], clf_hidden_pad)
    out["wc2"] = pad_w(p["wc2"], clf_hidden_pad, num_classes_pad).astype(jnp.bfloat16)
    out["bc2"] = pad_b(p["bc2"], num_classes_pad)
    return out


# ---------------------------------------------------------------------------
# Pure-JAX f32 reference (correctness check with relative tolerance).
# ---------------------------------------------------------------------------
def reference_forward(x_nchw, eps, p):
    B = x_nchw.shape[0]
    x = x_nchw.reshape(B, -1)
    h1 = jnp.maximum(x @ p["w1"] + p["b1"], 0.0)
    mu = h1 @ p["wmu"] + p["bmu"]
    logvar = h1 @ p["wlv"] + p["blv"]
    z = mu + eps * jnp.exp(0.5 * logvar)
    h3 = jnp.maximum(z @ p["w3"] + p["b3"], 0.0)
    recon = jax.nn.sigmoid(h3 @ p["w4"] + p["b4"])
    c1 = jnp.maximum(recon @ p["wc1"] + p["bc1"], 0.0)
    return c1 @ p["wc2"] + p["bc2"]


if __name__ == "__main__":
    # Small shapes: batch=2, 1x16x16 images -> 256 features.
    B, C, H, W = 2, 1, 16, 16
    IN_DIM = C * H * W          # 256
    ENC_HIDDEN = 64
    LATENT = 16
    CLF_HIDDEN = 32
    NUM_CLASSES = 10

    ENC_HIDDEN_PAD = _round_up(ENC_HIDDEN, 128)     # 128
    LATENT_PAD = _round_up(LATENT, 64)              # 64  (fused head -> 128 lanes)
    CLF_HIDDEN_PAD = _round_up(CLF_HIDDEN, 128)     # 128
    NUM_CLASSES_PAD = _round_up(NUM_CLASSES, 128)   # 128

    root = jax.random.PRNGKey(0)
    k_x, k_eps, k_params = jax.random.split(root, 3)

    x = jax.random.normal(k_x, (B, C, H, W), dtype=jnp.float32)
    eps = jax.random.normal(k_eps, (B, LATENT), dtype=jnp.float32)   # reparam noise
    params = init_params(k_params, IN_DIM, ENC_HIDDEN, LATENT, CLF_HIDDEN, NUM_CLASSES)
    packed = prepare_params(
        params,
        enc_hidden_pad=ENC_HIDDEN_PAD,
        latent_pad=LATENT_PAD,
        clf_hidden_pad=CLF_HIDDEN_PAD,
        num_classes_pad=NUM_CLASSES_PAD,
    )

    logits = vae_classifier_forward(
        x, eps, packed,
        num_classes=NUM_CLASSES,
        latent_pad=LATENT_PAD,
    )
    jax.block_until_ready(logits)

    assert logits.shape == (B, NUM_CLASSES)
    assert logits.dtype == jnp.float32
    assert bool(jnp.all(jnp.isfinite(logits)))

    # Relative-tolerance check vs f32 reference (kernel matmuls run in bf16,
    # sigmoid uses the EUP approx reciprocal).
    ref = reference_forward(x, eps, params)
    max_diff = float(jnp.max(jnp.abs(logits - ref)))
    tol = 2e-2 + 5e-2 * float(jnp.max(jnp.abs(ref)))
    assert max_diff <= tol, (max_diff, tol)

    print("KERNEL_OK")
</pallas_src>

<mosaic_0001>
module attributes {stable_mosaic.version = 11 : i64} {
  func.func @vae_clf_kernel(%arg0: i32, %arg1: memref<16x256xbf16, #tpu.memory_space<vmem>>, %arg2: memref<16x64xf32, #tpu.memory_space<vmem>>, %arg3: memref<256x128xbf16, #tpu.memory_space<vmem>>, %arg4: memref<1x128xf32, #tpu.memory_space<vmem>>, %arg5: memref<128x128xbf16, #tpu.memory_space<vmem>>, %arg6: memref<1x128xf32, #tpu.memory_space<vmem>>, %arg7: memref<64x128xbf16, #tpu.memory_space<vmem>>, %arg8: memref<1x128xf32, #tpu.memory_space<vmem>>, %arg9: memref<128x256xbf16, #tpu.memory_space<vmem>>, %arg10: memref<1x256xf32, #tpu.memory_space<vmem>>, %arg11: memref<256x128xbf16, #tpu.memory_space<vmem>>, %arg12: memref<1x128xf32, #tpu.memory_space<vmem>>, %arg13: memref<128x128xbf16, #tpu.memory_space<vmem>>, %arg14: memref<1x128xf32, #tpu.memory_space<vmem>>, %arg15: memref<16x128xf32, #tpu.memory_space<vmem>>) attributes {dimension_semantics = [#tpu.dimension_semantics<parallel>], iteration_bounds = array<i64: 1>, scalar_prefetch = 0 : i64, scratch_operands = 0 : i64, tpu.core_type = #tpu.core_type<tc>, window_params = [{transform_indices = @transform_0, window_bounds = array<i64: 16, 256>}, {transform_indices = @transform_1, window_bounds = array<i64: 16, 64>}, {pipeline_mode = #tpu.pipeline_mode<synchronous>, transform_indices = @transform_2, window_bounds = array<i64: 256, 128>}, {pipeline_mode = #tpu.pipeline_mode<synchronous>, transform_indices = @transform_3, window_bounds = array<i64: 1, 128>}, {pipeline_mode = #tpu.pipeline_mode<synchronous>, transform_indices = @transform_4, window_bounds = array<i64: 128, 128>}, {pipeline_mode = #tpu.pipeline_mode<synchronous>, transform_indices = @transform_5, window_bounds = array<i64: 1, 128>}, {pipeline_mode = #tpu.pipeline_mode<synchronous>, transform_indices = @transform_6, window_bounds = array<i64: 64, 128>}, {pipeline_mode = #tpu.pipeline_mode<synchronous>, transform_indices = @transform_7, window_bounds = array<i64: 1, 128>}, {pipeline_mode = #tpu.pipeline_mode<synchronous>, transform_indices = @transform_8, window_bounds = array<i64: 128, 256>}, {pipeline_mode = #tpu.pipeline_mode<synchronous>, transform_indices = @transform_9, window_bounds = array<i64: 1, 256>}, {pipeline_mode = #tpu.pipeline_mode<synchronous>, transform_indices = @transform_10, window_bounds = array<i64: 256, 128>}, {pipeline_mode = #tpu.pipeline_mode<synchronous>, transform_indices = @transform_11, window_bounds = array<i64: 1, 128>}, {pipeline_mode = #tpu.pipeline_mode<synchronous>, transform_indices = @transform_12, window_bounds = array<i64: 128, 128>}, {pipeline_mode = #tpu.pipeline_mode<synchronous>, transform_indices = @transform_13, window_bounds = array<i64: 1, 128>}, {transform_indices = @transform_14, window_bounds = array<i64: 16, 128>}]} {
    %c0 = arith.constant 0 : index
    %c0_0 = arith.constant 0 : index
    %0 = vector.load %arg1[%c0, %c0_0] : memref<16x256xbf16, #tpu.memory_space<vmem>>, vector<16x256xbf16>
    %c0_1 = arith.constant 0 : index
    %c0_2 = arith.constant 0 : index
    %1 = vector.load %arg3[%c0_1, %c0_2] : memref<256x128xbf16, #tpu.memory_space<vmem>>, vector<256x128xbf16>
    %cst = arith.constant dense<0.000000e+00> : vector<16x128xf32>
    %2 = tpu.matmul %0, %1, %cst {dimension_numbers = #tpu.dot_dimension_numbers<[1], [0], [0], [1], [0, 0, 1, 1], [], []>} : vector<16x256xbf16>, vector<256x128xbf16>, vector<16x128xf32> -> vector<16x128xf32>
    %c0_3 = arith.constant 0 : index
    %c0_4 = arith.constant 0 : index
    %3 = vector.load %arg4[%c0_3, %c0_4] : memref<1x128xf32, #tpu.memory_space<vmem>>, vector<1x128xf32>
    %4 = vector.broadcast %3 : vector<1x128xf32> to vector<16x128xf32>
    %5 = arith.addf %2, %4 : vector<16x128xf32>
    %cst_5 = arith.constant 0.000000e+00 : f32
    %6 = vector.broadcast %cst_5 : f32 to vector<16x128xf32>
    %7 = arith.maximumf %5, %6 : vector<16x128xf32>
    %8 = arith.truncf %7 : vector<16x128xf32> to vector<16x128xbf16>
    %c0_6 = arith.constant 0 : index
    %c0_7 = arith.constant 0 : index
    %9 = vector.load %arg5[%c0_6, %c0_7] : memref<128x128xbf16, #tpu.memory_space<vmem>>, vector<128x128xbf16>
    %cst_8 = arith.constant dense<0.000000e+00> : vector<16x128xf32>
    %10 = tpu.matmul %8, %9, %cst_8 {dimension_numbers = #tpu.dot_dimension_numbers<[1], [0], [0], [1], [0, 0, 1, 1], [], []>} : vector<16x128xbf16>, vector<128x128xbf16>, vector<16x128xf32> -> vector<16x128xf32>
    %c0_9 = arith.constant 0 : index
    %c0_10 = arith.constant 0 : index
    %11 = vector.load %arg6[%c0_9, %c0_10] : memref<1x128xf32, #tpu.memory_space<vmem>>, vector<1x128xf32>
    %12 = vector.broadcast %11 : vector<1x128xf32> to vector<16x128xf32>
    %13 = arith.addf %10, %12 : vector<16x128xf32>
    %14 = vector.extract_strided_slice %13 {offsets = [0, 0], sizes = [16, 64], strides = [1, 1]} : vector<16x128xf32> to vector<16x64xf32>
    %15 = vector.extract_strided_slice %13 {offsets = [0, 64], sizes = [16, 64], strides = [1, 1]} : vector<16x128xf32> to vector<16x64xf32>
    %cst_11 = arith.constant 5.000000e-01 : f32
    %16 = vector.broadcast %cst_11 : f32 to vector<16x64xf32>
    %17 = arith.mulf %16, %15 : vector<16x64xf32>
    %18 = math.exp %17 : vector<16x64xf32>
    %c0_12 = arith.constant 0 : index
    %c0_13 = arith.constant 0 : index
    %19 = vector.load %arg2[%c0_12, %c0_13] : memref<16x64xf32, #tpu.memory_space<vmem>>, vector<16x64xf32>
    %20 = arith.mulf %19, %18 : vector<16x64xf32>
    %21 = arith.addf %14, %20 : vector<16x64xf32>
    %22 = arith.truncf %21 : vector<16x64xf32> to vector<16x64xbf16>
    %c0_14 = arith.constant 0 : index
    %c0_15 = arith.constant 0 : index
    %23 = vector.load %arg7[%c0_14, %c0_15] : memref<64x128xbf16, #tpu.memory_space<vmem>>, vector<64x128xbf16>
    %cst_16 = arith.constant dense<0.000000e+00> : vector<16x128xf32>
    %24 = tpu.matmul %22, %23, %cst_16 {dimension_numbers = #tpu.dot_dimension_numbers<[1], [0], [0], [1], [0, 0, 1, 1], [], []>} : vector<16x64xbf16>, vector<64x128xbf16>, vector<16x128xf32> -> vector<16x128xf32>
    %c0_17 = arith.constant 0 : index
    %c0_18 = arith.constant 0 : index
    %25 = vector.load %arg8[%c0_17, %c0_18] : memref<1x128xf32, #tpu.memory_space<vmem>>, vector<1x128xf32>
    %26 = vector.broadcast %25 : vector<1x128xf32> to vector<16x128xf32>
    %27 = arith.addf %24, %26 : vector<16x128xf32>
    %cst_19 = arith.constant 0.000000e+00 : f32
    %28 = vector.broadcast %cst_19 : f32 to vector<16x128xf32>
    %29 = arith.maximumf %27, %28 : vector<16x128xf32>
    %30 = arith.truncf %29 : vector<16x128xf32> to vector<16x128xbf16>
    %c0_20 = arith.constant 0 : index
    %c0_21 = arith.constant 0 : index
    %31 = vector.load %arg9[%c0_20, %c0_21] : memref<128x256xbf16, #tpu.memory_space<vmem>>, vector<128x256xbf16>
    %cst_22 = arith.constant dense<0.000000e+00> : vector<16x256xf32>
    %32 = tpu.matmul %30, %31, %cst_22 {dimension_numbers = #tpu.dot_dimension_numbers<[1], [0], [0], [1], [0, 0, 1, 1], [], []>} : vector<16x128xbf16>, vector<128x256xbf16>, vector<16x256xf32> -> vector<16x256xf32>
    %c0_23 = arith.constant 0 : index
    %c0_24 = arith.constant 0 : index
    %33 = vector.load %arg10[%c0_23, %c0_24] : memref<1x256xf32, #tpu.memory_space<vmem>>, vector<1x256xf32>
    %34 = vector.broadcast %33 : vector<1x256xf32> to vector<16x256xf32>
    %35 = arith.addf %32, %34 : vector<16x256xf32>
    %cst_25 = arith.constant 0.000000e+00 : f32
    %36 = vector.broadcast %cst_25 : f32 to vector<16x256xf32>
    %37 = arith.subf %36, %35 : vector<16x256xf32>
    %38 = math.exp %37 : vector<16x256xf32>
    %cst_26 = arith.constant 1.000000e+00 : f32
    %39 = vector.broadcast %cst_26 : f32 to vector<16x256xf32>
    %40 = arith.addf %39, %38 : vector<16x256xf32>
    %41 = tpu.reciprocal %40 {approx = true} : vector<16x256xf32> -> vector<16x256xf32>
    %42 = arith.truncf %41 : vector<16x256xf32> to vector<16x256xbf16>
    %c0_27 = arith.constant 0 : index
    %c0_28 = arith.constant 0 : index
    %43 = vector.load %arg11[%c0_27, %c0_28] : memref<256x128xbf16, #tpu.memory_space<vmem>>, vector<256x128xbf16>
    %cst_29 = arith.constant dense<0.000000e+00> : vector<16x128xf32>
    %44 = tpu.matmul %42, %43, %cst_29 {dimension_numbers = #tpu.dot_dimension_numbers<[1], [0], [0], [1], [0, 0, 1, 1], [], []>} : vector<16x256xbf16>, vector<256x128xbf16>, vector<16x128xf32> -> vector<16x128xf32>
    %c0_30 = arith.constant 0 : index
    %c0_31 = arith.constant 0 : index
    %45 = vector.load %arg12[%c0_30, %c0_31] : memref<1x128xf32, #tpu.memory_space<vmem>>, vector<1x128xf32>
    %46 = vector.broadcast %45 : vector<1x128xf32> to vector<16x128xf32>
    %47 = arith.addf %44, %46 : vector<16x128xf32>
    %cst_32 = arith.constant 0.000000e+00 : f32
    %48 = vector.broadcast %cst_32 : f32 to vector<16x128xf32>
    %49 = arith.maximumf %47, %48 : vector<16x128xf32>
    %50 = arith.truncf %49 : vector<16x128xf32> to vector<16x128xbf16>
    %c0_33 = arith.constant 0 : index
    %c0_34 = arith.constant 0 : index
    %51 = vector.load %arg13[%c0_33, %c0_34] : memref<128x128xbf16, #tpu.memory_space<vmem>>, vector<128x128xbf16>
    %cst_35 = arith.constant dense<0.000000e+00> : vector<16x128xf32>
    %52 = tpu.matmul %50, %51, %cst_35 {dimension_numbers = #tpu.dot_dimension_numbers<[1], [0], [0], [1], [0, 0, 1, 1], [], []>} : vector<16x128xbf16>, vector<128x128xbf16>, vector<16x128xf32> -> vector<16x128xf32>
    %c0_36 = arith.constant 0 : index
    %c0_37 = arith.constant 0 : index
    %53 = vector.load %arg14[%c0_36, %c0_37] : memref<1x128xf32, #tpu.memory_space<vmem>>, vector<1x128xf32>
    %54 = vector.broadcast %53 : vector<1x128xf32> to vector<16x128xf32>
    %55 = arith.addf %52, %54 : vector<16x128xf32>
    %c0_38 = arith.constant 0 : index
    %c0_39 = arith.constant 0 : index
    %56 = vector.load %arg15[%c0_38, %c0_39] : memref<16x128xf32, #tpu.memory_space<vmem>>, vector<16x128xf32>
    tpu.vector_store %arg15[%c0_38, %c0_39], %55 {strides = array<i32>} : memref<16x128xf32, #tpu.memory_space<vmem>>, vector<16x128xf32>,
    return
  }
  func.func @transform_0(%arg0: i32) -> (i32, i32) {
    %c0_i32 = arith.constant 0 : i32
    %c0_i32_0 = arith.constant 0 : i32
    return %arg0, %c0_i32 : i32, i32
  }
  func.func @transform_1(%arg0: i32) -> (i32, i32) {
    %c0_i32 = arith.constant 0 : i32
    %c0_i32_0 = arith.constant 0 : i32
    return %arg0, %c0_i32 : i32, i32
  }
  func.func @transform_2(%arg0: i32) -> (i32, i32) {
    %c0_i32 = arith.constant 0 : i32
    %c0_i32_0 = arith.constant 0 : i32
    %c0_i32_1 = arith.constant 0 : i32
    return %c0_i32, %c0_i32_0 : i32, i32
  }
  func.func @transform_3(%arg0: i32) -> (i32, i32) {
    %c0_i32 = arith.constant 0 : i32
    %c0_i32_0 = arith.constant 0 : i32
    %c0_i32_1 = arith.constant 0 : i32
    return %c0_i32, %c0_i32_0 : i32, i32
  }
  func.func @transform_4(%arg0: i32) -> (i32, i32) {
    %c0_i32 = arith.constant 0 : i32
    %c0_i32_0 = arith.constant 0 : i32
    %c0_i32_1 = arith.constant 0 : i32
    return %c0_i32, %c0_i32_0 : i32, i32
  }
  func.func @transform_5(%arg0: i32) -> (i32, i32) {
    %c0_i32 = arith.constant 0 : i32
    %c0_i32_0 = arith.constant 0 : i32
    %c0_i32_1 = arith.constant 0 : i32
    return %c0_i32, %c0_i32_0 : i32, i32
  }
  func.func @transform_6(%arg0: i32) -> (i32, i32) {
    %c0_i32 = arith.constant 0 : i32
    %c0_i32_0 = arith.constant 0 : i32
    %c0_i32_1 = arith.constant 0 : i32
    return %c0_i32, %c0_i32_0 : i32, i32
  }
  func.func @transform_7(%arg0: i32) -> (i32, i32) {
    %c0_i32 = arith.constant 0 : i32
    %c0_i32_0 = arith.constant 0 : i32
    %c0_i32_1 = arith.constant 0 : i32
    return %c0_i32, %c0_i32_0 : i32, i32
  }
  func.func @transform_8(%arg0: i32) -> (i32, i32) {
    %c0_i32 = arith.constant 0 : i32
    %c0_i32_0 = arith.constant 0 : i32
    %c0_i32_1 = arith.constant 0 : i32
    return %c0_i32, %c0_i32_0 : i32, i32
  }
  func.func @transform_9(%arg0: i32) -> (i32, i32) {
    %c0_i32 = arith.constant 0 : i32
    %c0_i32_0 = arith.constant 0 : i32
    %c0_i32_1 = arith.constant 0 : i32
    return %c0_i32, %c0_i32_0 : i32, i32
  }
  func.func @transform_10(%arg0: i32) -> (i32, i32) {
    %c0_i32 = arith.constant 0 : i32
    %c0_i32_0 = arith.constant 0 : i32
    %c0_i32_1 = arith.constant 0 : i32
    return %c0_i32, %c0_i32_0 : i32, i32
  }
  func.func @transform_11(%arg0: i32) -> (i32, i32) {
    %c0_i32 = arith.constant 0 : i32
    %c0_i32_0 = arith.constant 0 : i32
    %c0_i32_1 = arith.constant 0 : i32
    return %c0_i32, %c0_i32_0 : i32, i32
  }
  func.func @transform_12(%arg0: i32) -> (i32, i32) {
    %c0_i32 = arith.constant 0 : i32
    %c0_i32_0 = arith.constant 0 : i32
    %c0_i32_1 = arith.constant 0 : i32
    return %c0_i32, %c0_i32_0 : i32, i32
  }
  func.func @transform_13(%arg0: i32) -> (i32, i32) {
    %c0_i32 = arith.constant 0 : i32
    %c0_i32_0 = arith.constant 0 : i32
    %c0_i32_1 = arith.constant 0 : i32
    return %c0_i32, %c0_i32_0 : i32, i32
  }
  func.func @transform_14(%arg0: i32) -> (i32, i32) {
    %c0_i32 = arith.constant 0 : i32
    %c0_i32_0 = arith.constant 0 : i32
    return %arg0, %c0_i32 : i32, i32
  }
}

</mosaic_0001>

<bundles_post_ra>
// kernel: tpu_custom_call.1
= control target key start
LH: loop header
LB: loop body
LE: loop exit
PB: predicated region body
PF: predicated region fallthrough
CT: control target
= control target key end

     0   :  { %19 = vsyncpa [#allocation3], 0  ;;  %s1848_s0 = inlined_call_operand.hbm [shape: bf16[16,256], index: 0, kind: input, shape index: {}]   ;;  %s1849_s1 = inlined_call_operand.hbm [shape: f32[16,64], index: 1, kind: input, shape index: {}]   ;;  %s1850_s2 = inlined_call_operand.hbm [shape: bf16[256,128], index: 2, kind: input, shape index: {}]   ;;  %s1851_s3 = inlined_call_operand.vmem [shape: f32[1,128], index: 3, kind: input, shape index: {}]   ;;  %s1852_s4 = inlined_call_operand.hbm [shape: bf16[128,128], index: 4, kind: input, shape index: {}]   ;;  %s1853_s5 = inlined_call_operand.vmem [shape: f32[1,128], index: 5, kind: input, shape index: {}]   ;;  %s1854_s6 = inlined_call_operand.hbm [shape: bf16[64,128], index: 6, kind: input, shape index: {}]   ;;  %s1855_s7 = inlined_call_operand.vmem [shape: f32[1,128], index: 7, kind: input, shape index: {}]   ;;  %s1856_s8 = inlined_call_operand.hbm [shape: bf16[128,256], index: 8, kind: input, shape index: {}]   ;;  %s1857_s9 = inlined_call_operand.vmem [shape: f32[1,256], index: 9, kind: input, shape index: {}]   ;;  %s1858_s10 = inlined_call_operand.hbm [shape: bf16[256,128], index: 10, kind: input, shape index: {}]   ;;  %s1859_s11 = inlined_call_operand.vmem [shape: f32[1,128], index: 11, kind: input, shape index: {}]   ;;  %s1860_s12 = inlined_call_operand.hbm [shape: bf16[128,128], index: 12, kind: input, shape index: {}]   ;;  %s1861_s13 = inlined_call_operand.vmem [shape: f32[1,128], index: 13, kind: input, shape index: {}]   ;;  %s1862_s14 = inlined_call_operand.hbm [shape: f32[16,128], index: 14, kind: output, shape index: {}]  }
   0x1   :  { %20 = vsyncpa [#allocation6], 0 }
   0x2   :  { %21 = vsyncpa [#allocation9], 0 }
   0x3   :  { %22 = vsyncpa [#allocation12], 0 }
   0x4   :  { %23 = vsyncpa [#allocation15], 0 }
   0x5   :  { %24 = vsyncpa [#allocation4], 0  ;;  %s1576_s29 = smov [#allocation5]   ;;  %s1366_s17 = scalar_lea.hbm %s1849_s1, 256 }
   0x6   :  { %s42_s30 = sshll.u32 %s1576_s29, 4  ;;  %p1367_p0 = scmp.ne.s32.totalorder %s1849_s1, %s1366_s17  ;;  %s43_s30 = int_to_ptr.vmem [resolvable:$true] %s42_s30 }
   0x7   :  { %p1370_p1 = scmp.lt.u32.totalorder %s1366_s17, %s1849_s1 }
   0x9   :  { %p1372_p2 = pnand %p1370_p1, %p1367_p0 }
   0xb   :  { %1375 = shalt.err (!%p1372_p2)
}
   0xc   :  { %s1376_s22 = scalar_lea.vmem %s43_s30, 256  ;;  %p1381_p4 = scmp.lt.s32.totalorder %s43_s30, %s43_s30 }
   0xd   :  { %p1377_p3 = scmp.ne.s32.totalorder %s43_s30, %s1376_s22  ;;  %p1382_p5 = scmp.lt.s32.totalorder %s1376_s22, %s1376_s22 }
   0xf   :  { %p1383_p6 = por %p1382_p5, %p1381_p4 }
  0x11   :  { %p1384_p7 = pnand %p1383_p6, %p1377_p3 }
  0x13   :  { %1387 = shalt.err (!%p1384_p7)
}
  0x14   :  { %s1577_s23 = smov 128   ;;  %s1578_s24 = smov 8  }
  0x15   :  { %48 = dma.hbm_to_vmem [thread:$0]  %s1849_s1, 256, %s43_s30, [#allocation6], %s1577_s23, %s1577_s23, %s1578_s24  }
  0x16   :  { %s1579_s27 = smov [#allocation8]   ;;  %s1580_s29 = smov [#allocation11]  }
  0x17   :  { %s68_s28 = sshll.u32 %s1579_s27, 4  ;;  %s96_s15 = sshll.u32 %s1580_s29, 4  ;;  %s69_s28 = int_to_ptr.vmem [resolvable:$true] %s68_s28  ;;  %s97_s15 = int_to_ptr.vmem [resolvable:$true] %s96_s15 }
  0x18   :  { %s1388_s18 = scalar_lea.hbm %s1852_s4, 1024 }
  0x19   :  { %p1389_p8 = scmp.ne.s32.totalorder %s1852_s4, %s1388_s18  ;;  %p1392_p9 = scmp.lt.u32.totalorder %s1388_s18, %s1852_s4 }
  0x1b   :  { %p1394_p10 = pnand %p1392_p9, %p1389_p8 }
  0x1d   :  { %1397 = shalt.err (!%p1394_p10)
}
  0x1e   :  { %s1398_s1 = scalar_lea.vmem %s69_s28, 1024  ;;  %p1403_p12 = scmp.lt.s32.totalorder %s69_s28, %s69_s28 }
  0x1f   :  { %p1399_p11 = scmp.ne.s32.totalorder %s69_s28, %s1398_s1  ;;  %p1404_p13 = scmp.lt.s32.totalorder %s1398_s1, %s1398_s1 }
  0x21   :  { %p1405_p0 = por %p1404_p13, %p1403_p12 }
  0x23   :  { %p1406_p1 = pnand %p1405_p0, %p1399_p11 }
  0x25   :  { %1409 = shalt.err (!%p1406_p1)
}
  0x26   :  { %s1581_s30 = smov 64   ;;  %s1582_s25 = smov 4  }
  0x27   :  { %74 = dma.hbm_to_vmem [thread:$0]  %s1852_s4, 1024, %s69_s28, [#allocation9], %s1581_s30, %s1581_s30, %s1582_s25  }
  0x28   :  { %s1410_s17 = scalar_lea.hbm %s1856_s8, 2048 }
  0x29   :  { %p1411_p2 = scmp.ne.s32.totalorder %s1856_s8, %s1410_s17  ;;  %p1414_p3 = scmp.lt.u32.totalorder %s1410_s17, %s1856_s8 }
  0x2b   :  { %p1416_p4 = pnand %p1414_p3, %p1411_p2 }
  0x2d   :  { %1419 = shalt.err (!%p1416_p4)
}
  0x2e   :  { %s1420_s22 = scalar_lea.vmem %s97_s15, 2048  ;;  %p1425_p6 = scmp.lt.s32.totalorder %s97_s15, %s97_s15 }
  0x2f   :  { %p1421_p5 = scmp.ne.s32.totalorder %s97_s15, %s1420_s22  ;;  %p1426_p7 = scmp.lt.s32.totalorder %s1420_s22, %s1420_s22 }
  0x31   :  { %p1427_p8 = por %p1426_p7, %p1425_p6 }
  0x33   :  { %p1428_p9 = pnand %p1427_p8, %p1421_p5 }
  0x35   :  { %1431 = shalt.err (!%p1428_p9)
}
  0x36   :  { %102 = dma.hbm_to_vmem [thread:$0]  %s1856_s8, 2048, %s97_s15, [#allocation12], %s1577_s23, %s1577_s23, %s1578_s24  }
  0x37   :  { %s1583_s1 = smov [#allocation2]   ;;  %s1584_s27 = smov [#allocation7]  }
  0x38   :  { %s30_s26 = sshll.u32 %s1583_s1, 4  ;;  %s54_s29 = sshll.u32 %s1584_s27, 4  ;;  %s31_s26 = int_to_ptr.vmem [resolvable:$true] %s30_s26  ;;  %s55_s29 = int_to_ptr.vmem [resolvable:$true] %s54_s29 }
  0x39   :  { %s1432_s18 = scalar_lea.hbm %s1848_s0, 256 }
  0x3a   :  { %p1433_p10 = scmp.ne.s32.totalorder %s1848_s0, %s1432_s18  ;;  %p1436_p11 = scmp.lt.u32.totalorder %s1432_s18, %s1848_s0 }
  0x3c   :  { %p1438_p12 = pnand %p1436_p11, %p1433_p10 }
  0x3e   :  { %1441 = shalt.err (!%p1438_p12)
}
  0x3f   :  { %s1442_s8 = scalar_lea.vmem %s31_s26, 256  ;;  %p1447_p0 = scmp.lt.s32.totalorder %s31_s26, %s31_s26 }
  0x40   :  { %p1443_p13 = scmp.ne.s32.totalorder %s31_s26, %s1442_s8  ;;  %p1448_p1 = scmp.lt.s32.totalorder %s1442_s8, %s1442_s8 }
  0x42   :  { %p1449_p2 = por %p1448_p1, %p1447_p0 }
  0x44   :  { %p1450_p3 = pnand %p1449_p2, %p1443_p13 }
  0x46   :  { %1453 = shalt.err (!%p1450_p3)
}
  0x47   :  { %36 = dma.hbm_to_vmem [thread:$0]  %s1848_s0, 256, %s31_s26, [#allocation3], %s1577_s23, %s1577_s23, %s1578_s24  }
  0x48   :  { %s1454_s27 = scalar_lea.hbm %s1850_s2, 2048 }
  0x49   :  { %p1455_p4 = scmp.ne.s32.totalorder %s1850_s2, %s1454_s27  ;;  %p1458_p5 = scmp.lt.u32.totalorder %s1454_s27, %s1850_s2 }
  0x4b   :  { %p1460_p6 = pnand %p1458_p5, %p1455_p4 }
  0x4d   :  { %1463 = shalt.err (!%p1460_p6)
}
  0x4e   :  { %s1464_s20 = scalar_lea.vmem %s55_s29, 2048  ;;  %p1469_p8 = scmp.lt.s32.totalorder %s55_s29, %s55_s29 }
  0x4f   :  { %p1465_p7 = scmp.ne.s32.totalorder %s55_s29, %s1464_s20  ;;  %p1470_p9 = scmp.lt.s32.totalorder %s1464_s20, %s1464_s20 }
  0x51   :  { %p1471_p10 = por %p1470_p9, %p1469_p8 }
  0x53   :  { %p1472_p11 = pnand %p1471_p10, %p1465_p7 }
  0x55   :  { %1475 = shalt.err (!%p1472_p11)
}
  0x56   :  { %60 = dma.hbm_to_vmem [thread:$0]  %s1850_s2, 2048, %s55_s29, [#allocation6], %s1581_s30, %s1581_s30, %s1582_s25  }
  0x57   :  { %s1585_s21 = smov [#allocation10]   ;;  %s1586_s8 = smov [#allocation13]  }
  0x58   :  { %s82_s22 = sshll.u32 %s1585_s21, 4  ;;  %s110_s15 = sshll.u32 %s1586_s8, 4  ;;  %s83_s22 = int_to_ptr.vmem [resolvable:$true] %s82_s22  ;;  %s111_s15 = int_to_ptr.vmem [resolvable:$true] %s110_s15 }
  0x59   :  { %s1476_s1 = scalar_lea.hbm %s1854_s6, 512 }
  0x5a   :  { %p1477_p12 = scmp.ne.s32.totalorder %s1854_s6, %s1476_s1  ;;  %p1480_p13 = scmp.lt.u32.totalorder %s1476_s1, %s1854_s6 }
  0x5c   :  { %p1482_p0 = pnand %p1480_p13, %p1477_p12 }
  0x5e   :  { %1485 = shalt.err (!%p1482_p0)
}
  0x5f   :  { %s1486_s2 = scalar_lea.vmem %s83_s22, 512  ;;  %p1491_p2 = scmp.lt.s32.totalorder %s83_s22, %s83_s22 }
  0x60   :  { %p1487_p1 = scmp.ne.s32.totalorder %s83_s22, %s1486_s2  ;;  %p1492_p3 = scmp.lt.s32.totalorder %s1486_s2, %s1486_s2 }
  0x62   :  { %p1493_p4 = por %p1492_p3, %p1491_p2 }
  0x64   :  { %p1494_p5 = pnand %p1493_p4, %p1487_p1 }
  0x66   :  { %1497 = shalt.err (!%p1494_p5)
}
  0x67   :  { %88 = dma.hbm_to_vmem [thread:$0]  %s1854_s6, 512, %s83_s22, [#allocation9], %s1581_s30, %s1581_s30, %s1582_s25  }
  0x68   :  { %s1498_s26 = scalar_lea.hbm %s1858_s10, 2048 }
  0x69   :  { %p1499_p6 = scmp.ne.s32.totalorder %s1858_s10, %s1498_s26  ;;  %p1502_p7 = scmp.lt.u32.totalorder %s1498_s26, %s1858_s10 }
  0x6b   :  { %p1504_p8 = pnand %p1502_p7, %p1499_p6 }
  0x6d   :  { %1507 = shalt.err (!%p1504_p8)
}
  0x6e   :  { %s1508_s1 = scalar_lea.vmem %s111_s15, 2048  ;;  %p1513_p10 = scmp.lt.s32.totalorder %s111_s15, %s111_s15 }
  0x6f   :  { %p1509_p9 = scmp.ne.s32.totalorder %s111_s15, %s1508_s1  ;;  %p1514_p11 = scmp.lt.s32.totalorder %s1508_s1, %s1508_s1 }
  0x71   :  { %p1515_p12 = por %p1514_p11, %p1513_p10 }
  0x73   :  { %p1516_p13 = pnand %p1515_p12, %p1509_p9 }
  0x75   :  { %1519 = shalt.err (!%p1516_p13)
}
  0x76   :  { %116 = dma.hbm_to_vmem [thread:$0]  %s1858_s10, 2048, %s111_s15, [#allocation12], %s1581_s30, %s1581_s30, %s1582_s25  }
  0x77   :  { %s1587_s27 = smov [#allocation14]   ;;  %s1520_s2 = scalar_lea.hbm %s1860_s12, 1024 }
  0x78   :  { %s124_s16 = sshll.u32 %s1587_s27, 4  ;;  %p1521_p0 = scmp.ne.s32.totalorder %s1860_s12, %s1520_s2  ;;  %s125_s16 = int_to_ptr.vmem [resolvable:$true] %s124_s16 }
  0x79   :  { %p1524_p1 = scmp.lt.u32.totalorder %s1520_s2, %s1860_s12 }
  0x7b   :  { %p1526_p2 = pnand %p1524_p1, %p1521_p0 }
  0x7d   :  { %1529 = shalt.err (!%p1526_p2)
}
  0x7e   :  { %s1530_s26 = scalar_lea.vmem %s125_s16, 1024  ;;  %p1535_p4 = scmp.lt.s32.totalorder %s125_s16, %s125_s16 }
  0x7f   :  { %p1531_p3 = scmp.ne.s32.totalorder %s125_s16, %s1530_s26  ;;  %p1536_p5 = scmp.lt.s32.totalorder %s1530_s26, %s1530_s26 }
  0x81   :  { %p1537_p6 = por %p1536_p5, %p1535_p4 }
  0x83   :  { %p1538_p7 = pnand %p1537_p6, %p1531_p3 }
  0x85   :  { %1541 = shalt.err (!%p1538_p7)
}
  0x86   :  { %130 = dma.hbm_to_vmem [thread:$0]  %s1860_s12, 1024, %s125_s16, [#allocation15], %s1581_s30, %s1581_s30, %s1582_s25  }
  0x87   :  { %1564 = dma.done.wait [#allocation3], 256  }
  0x88   :  { %1565 = vsyncadd [#allocation3], 4294967040 }
  0x89   :  { %1566 = dma.done.wait [#allocation6], 2304  }
  0x8a   :  { %1567 = vsyncadd [#allocation6], 4294964992 }
  0x8b   :  { %1568 = dma.done.wait [#allocation9], 1536  }
  0x8c   :  { %1569 = vsyncadd [#allocation9], 4294965760 }
  0x8d   :  { %1570 = dma.done.wait [#allocation12], 4096  }
  0x8e   :  { %1571 = vsyncadd [#allocation12], 4294963200 }
  0x8f   :  { %1572 = dma.done.wait [#allocation15], 1024  }
  0x90   :  { %1573 = vsyncadd [#allocation15], 4294966272  ;;  %v1588_v0 = vmov 0.0   ;;  %v1267_v1 = vld [vmem:[#allocation7 + $0x40] sm:$0xff]   ;;  %v1269_v3 = vld [vmem:[#allocation7 + $0x48] sm:$0xff]   ;;  %vm1589_vm0 = vmmov 0  }
  0x91   :  { %1199 = vmatprep.subr.bf16.mxu1 %v1588_v0  ;;  %v1268_v2 = vld [vmem:[#allocation7] sm:$0xff]   ;;  %1132 = vmatprep.subr.bf16.mxu0 %v1267_v1  ;;  %v1270_v4 = vld [vmem:[#allocation7 + $0x8] sm:$0xff]   ;;  %v1271_v5 = vld [vmem:[#allocation7 + $0x50] sm:$0xff]   ;;  %vm521_vm1 = vcmask 523264   ;;  %s1591_s6 = smov [#allocation16]  }
  0x92   :  { %1133 = vmatpush3.bf16.msra.mxu0 %v1268_v2  ;;  %v1272_v6 = vld [vmem:[#allocation7 + $0x10] sm:$0xff]   ;;  %v1273_v7 = vld [vmem:[#allocation7 + $0x58] sm:$0xff]   ;;  %v1275_v9 = vld [vmem:[#allocation7 + $0x60] sm:$0xff]   ;;  %1215 = vmatprep.mubr.msk.bf16.mxu1 %vm1589_vm0, %v1588_v0  ;;  %s1040_s22 = sshll.u32 %s1591_s6, 4  ;;  %s1041_s22 = int_to_ptr.vmem [resolvable:$true] %s1040_s22 }
  0x93   :  { %1134 = vmatprep.subr.bf16.mxu0 %v1269_v3  ;;  %v1274_v8 = vld [vmem:[#allocation7 + $0x18] sm:$0xff]   ;;  %v1276_v10 = vld [vmem:[#allocation7 + $0x20] sm:$0xff]   ;;  %v1277_v11 = vld [vmem:[#allocation7 + $0x68] sm:$0xff]   ;;  %p1547_p9 = scmp.lt.s32.totalorder %s1041_s22, %s1041_s22 }
  0x94   :  { %v1278_v12 = vld [vmem:[#allocation7 + $0x28] sm:$0xff]   ;;  %v1286_v14 = vld [vmem:[#allocation8] sm:$0xff]   ;;  %v1279_v15 = vld [vmem:[#allocation7 + $0x70] sm:$0xff]  }
  0x95   :  { %v1285_v13 = vld [vmem:[#allocation2 + $0x4] ss:$8 sps:$4 sm:$0xff]   ;;  %1200 = vmatpush3.bf16.msra.mxu1 %v1286_v14  ;;  %v1280_v17 = vld [vmem:[#allocation7 + $0x30] sm:$0xff]   ;;  %v1281_v18 = vld [vmem:[#allocation7 + $0x78] sm:$0xff]  }
  0x96   :  { %1135 = vmatpush3.bf16.msra.mxu0 %v1270_v4  ;;  %337 = vmatprep.mubr.bf16.mxu0 %v1285_v13  ;;  %v1287_v16 = vld [vmem:[#allocation8 + $0x8] sm:$0xff]   ;;  %v1288_v19 = vld [vmem:[#allocation8 + $0x10] sm:$0xff]   ;;  %v1282_v20 = vld [vmem:[#allocation7 + $0x38] sm:$0xff]  }
  0x97   :  { %1136 = vmatprep.subr.bf16.mxu0 %v1271_v5  ;;  %1201 = vmatprep.subr.bf16.mxu1 %v1588_v0  ;;  %v1289_v21 = vld [vmem:[#allocation8 + $0x18] sm:$0xff]   ;;  %v1283_v22 = vld [vmem:[#allocation2] ss:$8 sps:$4 sm:$0xff]   ;;  %v1292_v25 = vld [vmem:[#allocation8 + $0x30] sm:$0xff]  }
  0x98   :  { %v1290_v23 = vld [vmem:[#allocation8 + $0x20] sm:$0xff]   ;;  %v1291_v24 = vld [vmem:[#allocation8 + $0x28] sm:$0xff]   ;;  %v1293_v26 = vld [vmem:[#allocation8 + $0x38] sm:$0xff]  }
  0x99   :  { %1202 = vmatpush3.bf16.msra.mxu1 %v1287_v16  ;;  %v1056_v28 = vld [vmem:[%s1851_s3] ss:$0 sm:$0xff]  ;;  %v1295_v40 = vld [vmem:[#allocation10 + $0x8] sm:$0xff]   ;;  %v1296_v51 = vld [vmem:[#allocation10 + $0x10] sm:$0xff]  }
  0x9a   :  { %1137 = vmatpush3.bf16.msra.mxu0 %v1272_v6  ;;  %1203 = vmatprep.subr.bf16.mxu1 %v1588_v0  ;;  %v1294_v39 = vld [vmem:[#allocation10] sm:$0xff]   ;;  %v1297_v53 = vld [vmem:[#allocation10 + $0x18] sm:$0xff]   ;;  %v467_v5 = vld [vmem:[#allocation5] sm:$0xff] }
  0x9b   :  { %1138 = vmatprep.subr.bf16.mxu0 %v1273_v7  ;;  %v1075_v41 = vld [vmem:[%s1853_s5] ss:$0 sm:$0xff]  ;;  %v1300_v55 = vld [vmem:[#allocation11 + $0x4] ss:$8 sps:$4 sm:$0xff]   ;;  %v1303_v56 = vld [vmem:[#allocation11 + $0x14] ss:$8 sps:$4 sm:$0xff]  }
  0x9c   :  { %v1298_v54 = vld [vmem:[#allocation11] ss:$8 sps:$4 sm:$0xff]   ;;  %v1301_v58 = vld [vmem:[#allocation11 + $0x10] ss:$8 sps:$4 sm:$0xff]   ;;  %v1306_v59 = vld [vmem:[#allocation11 + $0x24] ss:$8 sps:$4 sm:$0xff]  }
  0x9d   :  { %1204 = vmatpush3.bf16.msra.mxu1 %v1288_v19  ;;  %v1304_v61 = vld [vmem:[#allocation11 + $0x20] ss:$8 sps:$4 sm:$0xff]   ;;  %v1309_v62 = vld [vmem:[#allocation11 + $0x34] ss:$8 sps:$4 sm:$0xff]   ;;  %v1307_v63 = vld [vmem:[#allocation11 + $0x30] ss:$8 sps:$4 sm:$0xff]  }
  0x9e   :  { %1139 = vmatpush3.bf16.msra.mxu0 %v1274_v8  ;;  %1205 = vmatprep.subr.bf16.mxu1 %v1588_v0  ;;  %v1312_v1 = vld [vmem:[#allocation11 + $0x44] ss:$8 sps:$4 sm:$0xff]   ;;  %v1310_v2 = vld [vmem:[#allocation11 + $0x40] ss:$8 sps:$4 sm:$0xff]   ;;  %v1315_v3 = vld [vmem:[#allocation11 + $0x54] ss:$8 sps:$4 sm:$0xff]  }
  0x9f   :  { %1140 = vmatprep.subr.bf16.mxu0 %v1275_v9  ;;  %v1313_v4 = vld [vmem:[#allocation11 + $0x50] ss:$8 sps:$4 sm:$0xff]   ;;  %v1318_v14 = vld [vmem:[#allocation11 + $0x64] ss:$8 sps:$4 sm:$0xff]   ;;  %v1321_v16 = vld [vmem:[#allocation11 + $0x74] ss:$8 sps:$4 sm:$0xff]  }
  0xa0   :  { %v468_v7 = vld [vmem:[#allocation5 + $0x8] sm:$0xff]  ;;  %v1084_v19 = vld [vmem:[%s1855_s7] ss:$0 sm:$0xff] }
  0xa1   :  { %1206 = vmatpush3.bf16.msra.mxu1 %v1289_v21 }
  0xa2   :  { %1141 = vmatpush3.bf16.msra.mxu0 %v1276_v10  ;;  %1207 = vmatprep.subr.bf16.mxu1 %v1588_v0 }
  0xa3   :  { %1142 = vmatprep.subr.bf16.mxu0 %v1277_v11 }
  0xa5   :  { %1208 = vmatpush3.bf16.msra.mxu1 %v1290_v23 }
  0xa6   :  { %1143 = vmatpush3.bf16.msra.mxu0 %v1278_v12  ;;  %1209 = vmatprep.subr.bf16.mxu1 %v1588_v0 }
  0xa7   :  { %1144 = vmatprep.subr.bf16.mxu0 %v1279_v15  ;;  %v1316_v15 = vld [vmem:[#allocation11 + $0x60] ss:$8 sps:$4 sm:$0xff]  }
  0xa9   :  { %1210 = vmatpush3.bf16.msra.mxu1 %v1291_v24 }
  0xaa   :  { %1145 = vmatpush3.bf16.msra.mxu0 %v1280_v17  ;;  %1211 = vmatprep.subr.bf16.mxu1 %v1588_v0  ;;  %v1319_v17 = vld [vmem:[#allocation11 + $0x70] ss:$8 sps:$4 sm:$0xff]  }
  0xab   :  { %1146 = vmatprep.subr.bf16.mxu0 %v1281_v18  ;;  %v1590_v18 = vmov 0  }
  0xad   :  { %1212 = vmatpush3.bf16.msra.mxu1 %v1292_v25 }
  0xae   :  { %1147 = vmatpush3.bf16.msra.mxu0 %v1282_v20  ;;  %1213 = vmatprep.subr.bf16.mxu1 %v1588_v0 }
  0xaf   :  { %1219 = vmatprep.subr.bf16.mxu0 %v1588_v0 }
  0xb1   :  { %338 = vmatmul.mubr.bf16.vlgmr.msra.gmra.mrb[0].mxu0 %v1283_v22  ;;  %1214 = vmatpush3.bf16.msra.mxu1 %v1293_v26 }
  0xb2   :  { %1227 = vmatprep.mubr.msk.bf16.mxu0 %vm1589_vm0, %v1588_v0  ;;  %1220 = vmatpush3.bf16.msra.mxu0 %v1294_v39  ;;  %v1332_v39 = vld [vmem:[#allocation13 + $0x68] sm:$0xff]  }
  0xb3   :  { %1221 = vmatprep.subr.bf16.mxu0 %v1588_v0  ;;  %677 = vmatprep.subr.bf16.mxu1 %v1300_v55 }
  0xb6   :  { %1222 = vmatpush3.bf16.msra.mxu0 %v1295_v40  ;;  %v1333_v40 = vld [vmem:[#allocation13 + $0x28] sm:$0xff]  }
  0xb7   :  { %1223 = vmatprep.subr.bf16.mxu0 %v1588_v0 }
  0xba   :  { %1224 = vmatpush3.bf16.msra.mxu0 %v1296_v51 }
  0xbb   :  { %1225 = vmatprep.subr.bf16.mxu0 %v1588_v0 }
  0xbe   :  { %1226 = vmatpush3.bf16.msra.mxu0 %v1297_v53  ;;  %v585_v53 = vld [vmem:[%s1857_s9] sm:$0x3] }
 0x184   :  { %v1148_v27 = vpop.f32.mrb[0].mxu0 }
 0x185   :  { %v1149_v29 = vpop.f32.mrb[1].mxu0 }
 0x186   :  { %v1150_v30 = vadd.f32 %v1149_v29, %v1148_v27  ;;  %v1151_v31 = vpop.f32.mrb[2].mxu0  ;;  %v1322_v29 = vld [vmem:[#allocation13 + $0x40] sm:$0xff]  }
 0x187   :  { %v1152_v32 = vpop.f32.mrb[3].mxu0  ;;  %1168 = vmatprep.subr.bf16.mxu0 %v1322_v29 }
 0x188   :  { %v340_v33 = vadd.f32 %v1150_v30, %v1056_v28  ;;  %v1153_v34 = vadd.f32 %v1152_v32, %v1151_v31  ;;  %v1323_v30 = vld [vmem:[#allocation13] sm:$0xff]   ;;  %v1324_v31 = vld [vmem:[#allocation13 + $0x48] sm:$0xff]  }
 0x189   :  { %v1325_v32 = vld [vmem:[#allocation13 + $0x8] sm:$0xff]  }
 0x18a   :  { %v343_v35 = vadd.f32 %v1153_v34, %v1056_v28  ;;  %v346_v36 = vmax.f32 %v340_v33, 0.0  ;;  %v1326_v33 = vld [vmem:[#allocation13 + $0x50] sm:$0xff]  }
 0x18b   :  { %v1327_v34 = vld [vmem:[#allocation13 + $0x10] sm:$0xff]  }
 0x18c   :  { %v347_v37 = vmax.f32 %v343_v35, 0.0  ;;  %v1328_v35 = vld [vmem:[#allocation13 + $0x58] sm:$0xff]  }
 0x18e   :  { %v348_v38 = vpack.c.bf16 %v347_v37, %v346_v36  ;;  %v1329_v36 = vld [vmem:[#allocation13 + $0x18] sm:$0xff]   ;;  %v1330_v37 = vld [vmem:[#allocation13 + $0x60] sm:$0xff]  }
 0x190   :  { %1216 = vmatmul.mubr.bf16.vlgmr.msra.gmra.mrb[0].mxu1 %v348_v38  ;;  %v1331_v38 = vld [vmem:[#allocation13 + $0x20] sm:$0xff]  }
 0x191   :  { %678 = vmatpush1.bf16.msra.mxu1 %v1298_v54  ;;  %709 = vmatprep.mubr.bf16.mxu1 %v1590_v18 }
 0x192   :  { %679 = vmatprep.subr.bf16.mxu1 %v1303_v56 }
 0x195   :  { %680 = vmatpush1.bf16.msra.mxu1 %v1301_v58 }
 0x196   :  { %681 = vmatprep.subr.bf16.mxu1 %v1306_v59 }
 0x199   :  { %682 = vmatpush1.bf16.msra.mxu1 %v1304_v61 }
 0x19a   :  { %683 = vmatprep.subr.bf16.mxu1 %v1309_v62 }
 0x19d   :  { %684 = vmatpush1.bf16.msra.mxu1 %v1307_v63 }
 0x19e   :  { %685 = vmatprep.subr.bf16.mxu1 %v1312_v1 }
 0x1a1   :  { %686 = vmatpush1.bf16.msra.mxu1 %v1310_v2 }
 0x1a2   :  { %687 = vmatprep.subr.bf16.mxu1 %v1315_v3 }
 0x1a5   :  { %688 = vmatpush1.bf16.msra.mxu1 %v1313_v4 }
 0x1a6   :  { %689 = vmatprep.subr.bf16.mxu1 %v1318_v14 }
 0x1a9   :  { %690 = vmatpush1.bf16.msra.mxu1 %v1316_v15 }
 0x1aa   :  { %691 = vmatprep.subr.bf16.mxu1 %v1321_v16 }
 0x1ad   :  { %692 = vmatpush1.bf16.msra.mxu1 %v1319_v17 }
 0x1ae   :  { %1231 = vmatprep.subr.bf16.mxu1 %v1588_v0 }
 0x263   :  { %v454_v42 = vpop.f32.mrb[0].mxu1 }
 0x264   :  { %v455_v43 = vadd.f32 %v1075_v41, %v454_v42  ;;  %v1217_v44 = vpop.f32.mrb[1].mxu1  ;;  %v1335_v42 = vld [vmem:[#allocation13 + $0x30] sm:$0xff]  }
 0x265   :  { %v457_v45 = vpop.f32.mrb[2].mxu1  ;;  %v1337_v44 = vld [vmem:[#allocation13 + $0x38] sm:$0xff]  }
 0x266   :  { %v461_v46 = vmul.f32 0.5, %v455_v43  ;;  %v458_v47 = vadd.f32 %v1075_v41, %v457_v45  ;;  %v1218_v48 = vpop.f32.mrb[3].mxu1  ;;  %v1334_v41 = vld [vmem:[#allocation13 + $0x70] sm:$0xff]   ;;  %v1338_v45 = vld [vmem:[#allocation14] sm:$0xff]  }
 0x267   :  { %v1341_v48 = vld [vmem:[#allocation14 + $0x18] sm:$0xff]  }
 0x268   :  { %v462_v49 = vmul.f32 0.5, %v458_v47  ;;  %v463_v50 = vmul.f32 1.442695, %v461_v46  ;;  %v1339_v46 = vld [vmem:[#allocation14 + $0x8] sm:$0xff]  }
 0x26a   :  { %v465_v52 = vmul.f32 1.442695, %v462_v49  ;;  %1346 = vpow2.f32 %v463_v50  ;;  %v1342_v49 = vld [vmem:[#allocation14 + $0x20] sm:$0xff]   ;;  %v587_v50 = vlaneseq }
 0x26c   :  { %1348 = vpow2.f32 %v465_v52  ;;  %v588_v51 = vshrl.u32 %v587_v50, 7 }
 0x26e   :  { %v589_v52 = vsub.s32 0, %v588_v51  ;;  %v593_v54 = vsub.s32 1, %v588_v51 }
 0x270   :  { %v590_v55 = vrot.slane %v585_v53, %v589_v52  ;;  %v594_v56 = vrot.slane %v585_v53, %v593_v54 }
 0x274   :  { %v1347_v57 = vpop.eup %1346 }
 0x275   :  { %471 = vrot.lane.b32.xlu0 %v1347_v57, %s1581_s30 }
 0x276   :  { %v1349_v60 = vpop.eup %1348 }
 0x279   :  { %473 = vrot.lane.b32.xlu0 %v1349_v60, %s1581_s30 }
 0x2e7   :  { %v472_v6 = vpop.permute.xlu0 %471 }
 0x2e8   :  { %v477_v8 = vmul.f32 %v472_v6, %v467_v5 }
 0x2ea   :  { %v479_v11 = vadd.f32 %v477_v8, %v455_v43  ;;  %v1336_v43 = vld [vmem:[#allocation13 + $0x78] sm:$0xff]  }
 0x2eb   :  { %v474_v9 = vpop.permute.xlu0 %473 }
 0x2ec   :  { %v478_v10 = vmul.f32 %v474_v9, %v468_v7 }
 0x2ee   :  { %v480_v12 = vadd.f32 %v478_v10, %v458_v47  ;;  %v1340_v47 = vld [vmem:[#allocation14 + $0x10] sm:$0xff]  }
 0x2f0   :  { %v481_v13 = vpack.c.bf16 %v480_v12, %v479_v11 }
 0x2f2   :  { %1228 = vmatmul.mubr.msk.bf16.vlgmr.msra.gmra.mrb[4].mxu0 %vm521_vm1, %v481_v13 }
 0x2f3   :  { %1169 = vmatpush3.bf16.msra.mxu0 %v1323_v30 }
 0x2f4   :  { %1170 = vmatprep.subr.bf16.mxu0 %v1324_v31 }
 0x2f7   :  { %1171 = vmatpush3.bf16.msra.mxu0 %v1325_v32 }
 0x2f8   :  { %1172 = vmatprep.subr.bf16.mxu0 %v1326_v33 }
 0x2fb   :  { %1173 = vmatpush3.bf16.msra.mxu0 %v1327_v34 }
 0x2fc   :  { %1174 = vmatprep.subr.bf16.mxu0 %v1328_v35 }
 0x2ff   :  { %1175 = vmatpush3.bf16.msra.mxu0 %v1329_v36 }
 0x300   :  { %1176 = vmatprep.subr.bf16.mxu0 %v1330_v37 }
 0x303   :  { %1177 = vmatpush3.bf16.msra.mxu0 %v1331_v38 }
 0x304   :  { %1178 = vmatprep.subr.bf16.mxu0 %v1332_v39 }
 0x307   :  { %1179 = vmatpush3.bf16.msra.mxu0 %v1333_v40 }
 0x308   :  { %1180 = vmatprep.subr.bf16.mxu0 %v1334_v41 }
 0x30b   :  { %1181 = vmatpush3.bf16.msra.mxu0 %v1335_v42 }
 0x30c   :  { %1182 = vmatprep.subr.bf16.mxu0 %v1336_v43 }
 0x30f   :  { %1183 = vmatpush3.bf16.msra.mxu0 %v1337_v44 }
 0x3c5   :  { %v559_v20 = vpop.f32.mrb[4].mxu0 }
 0x3c6   :  { %v560_v21 = vadd.f32 %v1084_v19, %v559_v20  ;;  %v1229_v22 = vpop.f32.mrb[5].mxu0 }
 0x3c7   :  { %v562_v23 = vpop.f32.mrb[6].mxu0 }
 0x3c8   :  { %v563_v24 = vadd.f32 %v1084_v19, %v562_v23  ;;  %v1230_v25 = vpop.f32.mrb[7].mxu0  ;;  %v566_v26 = vmax.f32 %v560_v21, 0.0 }
 0x3c9   :  { %v1344_v25 = vld [vmem:[#allocation14 + $0x30] sm:$0xff]  }
 0x3ca   :  { %v567_v27 = vmax.f32 %v563_v24, 0.0  ;;  %v1343_v24 = vld [vmem:[#allocation14 + $0x28] sm:$0xff]  }
 0x3cc   :  { %v568_v28 = vpack.c.bf16 %v567_v27, %v566_v26  ;;  %v1345_v26 = vld [vmem:[#allocation14 + $0x38] sm:$0xff]  }
 0x3ce   :  { %710 = vmatmul.mubr.bf16.vlgmr.msra.gmra.mrb[4].mxu1 %v568_v28  ;;  %v1106_v28 = vld [vmem:[%s1859_s11] ss:$0 sm:$0xff]  ;;  %s1542_s11 = scalar_lea.vmem %s1041_s22, 256 }
 0x3cf   :  { %1247 = vmatprep.mubr.msk.bf16.mxu1 %vm1589_vm0, %v1588_v0  ;;  %1232 = vmatpush3.bf16.msra.mxu1 %v1338_v45  ;;  %p1543_p8 = scmp.ne.s32.totalorder %s1041_s22, %s1542_s11  ;;  %p1548_p10 = scmp.lt.s32.totalorder %s1542_s11, %s1542_s11 }
 0x3d0   :  { %1233 = vmatprep.subr.bf16.mxu1 %v1588_v0 }
 0x3d1   :  { %p1549_p11 = por %p1548_p10, %p1547_p9 }
 0x3d3   :  { %1234 = vmatpush3.bf16.msra.mxu1 %v1339_v46  ;;  %p1550_p12 = pnand %p1549_p11, %p1543_p8 }
 0x3d4   :  { %1235 = vmatprep.subr.bf16.mxu1 %v1588_v0 }
 0x3d7   :  { %1236 = vmatpush3.bf16.msra.mxu1 %v1340_v47 }
 0x3d8   :  { %1237 = vmatprep.subr.bf16.mxu1 %v1588_v0 }
 0x3db   :  { %1238 = vmatpush3.bf16.msra.mxu1 %v1341_v48 }
 0x3dc   :  { %1239 = vmatprep.subr.bf16.mxu1 %v1588_v0 }
 0x3df   :  { %1240 = vmatpush3.bf16.msra.mxu1 %v1342_v49 }
 0x3e0   :  { %1241 = vmatprep.subr.bf16.mxu1 %v1588_v0 }
 0x3e3   :  { %1242 = vmatpush3.bf16.msra.mxu1 %v1343_v24 }
 0x3e4   :  { %1243 = vmatprep.subr.bf16.mxu1 %v1588_v0 }
 0x3e7   :  { %1244 = vmatpush3.bf16.msra.mxu1 %v1344_v25 }
 0x3e8   :  { %1245 = vmatprep.subr.bf16.mxu1 %v1588_v0  ;;  %v1123_v0 = vld [vmem:[%s1861_s13] ss:$0 sm:$0xff] }
 0x3eb   :  { %1246 = vmatpush3.bf16.msra.mxu1 %v1345_v26 }
 0x4a1   :  { %v711_v57 = vpop.f32.mrb[4].mxu1 }
 0x4a2   :  { %v712_v58 = vadd.f32 %v711_v57, %v590_v55  ;;  %v713_v59 = vpop.f32.mrb[5].mxu1 }
 0x4a3   :  { %v714_v60 = vadd.f32 %v713_v59, %v594_v56  ;;  %v715_v61 = vpop.f32.mrb[6].mxu1 }
 0x4a4   :  { %v720_v62 = vsub.f32 0.0, %v712_v58  ;;  %v716_v63 = vadd.f32 %v715_v61, %v590_v55  ;;  %v717_v1 = vpop.f32.mrb[7].mxu1 }
 0x4a5   :  { %v721_v2 = vsub.f32 0.0, %v714_v60  ;;  %v718_v3 = vadd.f32 %v717_v1, %v594_v56 }
 0x4a6   :  { %v724_v4 = vmul.f32 1.442695, %v720_v62  ;;  %v722_v5 = vsub.f32 0.0, %v716_v63 }
 0x4a7   :  { %v726_v6 = vmul.f32 1.442695, %v721_v2  ;;  %v723_v7 = vsub.f32 0.0, %v718_v3 }
 0x4a8   :  { %1350 = vpow2.f32 %v724_v4  ;;  %v728_v8 = vmul.f32 1.442695, %v722_v5 }
 0x4a9   :  { %1352 = vpow2.f32 %v726_v6  ;;  %v730_v9 = vmul.f32 1.442695, %v723_v7 }
 0x4aa   :  { %1354 = vpow2.f32 %v728_v8 }
 0x4ab   :  { %1356 = vpow2.f32 %v730_v9 }
 0x4b2   :  { %v1351_v10 = vpop.eup %1350 }
 0x4b3   :  { %v1353_v11 = vpop.eup %1352  ;;  %v732_v12 = vadd.f32 1.0, %v1351_v10 }
 0x4b4   :  { %v1355_v13 = vpop.eup %1354  ;;  %v733_v14 = vadd.f32 1.0, %v1353_v11 }
 0x4b5   :  { %v1357_v15 = vpop.eup %1356  ;;  %1358 = vrcp.f32 %v732_v12  ;;  %v734_v16 = vadd.f32 1.0, %v1355_v13 }
 0x4b6   :  { %1360 = vrcp.f32 %v733_v14  ;;  %v735_v17 = vadd.f32 1.0, %v1357_v15 }
 0x4b7   :  { %1362 = vrcp.f32 %v734_v16 }
 0x4b8   :  { %1364 = vrcp.f32 %v735_v17 }
 0x4bf   :  { %v1359_v18 = vpop.eup %1358 }
 0x4c0   :  { %v1361_v19 = vpop.eup %1360 }
 0x4c1   :  { %v1363_v20 = vpop.eup %1362 }
 0x4c2   :  { %v1365_v21 = vpop.eup %1364  ;;  %v740_v22 = vpack.c.bf16 %v1363_v20, %v1359_v18 }
 0x4c3   :  { %v741_v23 = vpack.c.bf16 %v1365_v21, %v1361_v19 }
 0x4c5   :  { %909 = vmatprep.mubr.bf16.mxu0 %v741_v23 }
 0x4c6   :  { %910 = vmatmul.mubr.bf16.vlgmr.msra.gmra.mrb[8].mxu0 %v740_v22 }
 0x599   :  { %v1184_v27 = vpop.f32.mrb[8].mxu0 }
 0x59a   :  { %v1185_v29 = vpop.f32.mrb[9].mxu0 }
 0x59b   :  { %v1186_v30 = vadd.f32 %v1185_v29, %v1184_v27  ;;  %v1187_v31 = vpop.f32.mrb[10].mxu0 }
 0x59c   :  { %v1188_v32 = vpop.f32.mrb[11].mxu0 }
 0x59d   :  { %v912_v33 = vadd.f32 %v1186_v30, %v1106_v28  ;;  %v1189_v34 = vadd.f32 %v1188_v32, %v1187_v31 }
 0x59f   :  { %v915_v35 = vadd.f32 %v1189_v34, %v1106_v28  ;;  %v918_v36 = vmax.f32 %v912_v33, 0.0 }
 0x5a1   :  { %v919_v37 = vmax.f32 %v915_v35, 0.0 }
 0x5a3   :  { %v920_v38 = vpack.c.bf16 %v919_v37, %v918_v36 }
 0x5a5   :  { %1248 = vmatmul.mubr.bf16.vlgmr.msra.gmra.mrb[8].mxu1 %v920_v38 }
 0x678   :  { %v1026_v39 = vpop.f32.mrb[8].mxu1 }
 0x679   :  { %v1027_v40 = vadd.f32 %v1123_v0, %v1026_v39  ;;  %v1249_v41 = vpop.f32.mrb[9].mxu1 }
 0x67a   :  { %v1029_v42 = vpop.f32.mrb[10].mxu1 }
 0x67b   :  { %1033 = vst [vmem:[#allocation16] sm:$0xff] %v1027_v40  ;;  %v1030_v43 = vadd.f32 %v1123_v0, %v1029_v42  ;;  %v1250_v44 = vpop.f32.mrb[11].mxu1 }
 0x67d   :  { %1034 = vst [vmem:[#allocation16 + $0x8] sm:$0xff] %v1030_v43 }
 0x67e   :  { %1553 = shalt.err (!%p1550_p12)
}
 0x67f   :  { %s1554_s16 = scalar_lea.hbm %s1862_s14, 256 }
 0x680   :  { %p1555_p13 = scmp.ne.s32.totalorder %s1862_s14, %s1554_s16  ;;  %p1558_p0 = scmp.lt.u32.totalorder %s1554_s16, %s1862_s14 }
 0x682   :  { %p1560_p1 = pnand %p1558_p0, %p1555_p13 }
 0x684   :  { %1563 = shalt.err (!%p1560_p1)
}
 0x685   :  { %1046 = dma.vmem_to_hbm [thread:$0]  %s1041_s22, 256, %s1862_s14, [#allocation4], %s1577_s23, %s1577_s23, %s1578_s24  }
 0x686   :  { %1574 = dma.done.wait [#allocation4], 256  }
 0x687   :  { %1575 = vsyncadd [#allocation4], 4294967040 }
 0x688   :  { %1050 = vsyncpa [#allocation3], 1 }
 0x689   :  { %1051 = vsyncpa [#allocation6], 1 }
 0x68a   :  { %1052 = vsyncpa [#allocation9], 1 }
 0x68b   :  { %1053 = vsyncpa [#allocation12], 1 }
 0x68c   :  { %1054 = vsyncpa [#allocation15], 1 }
 0x68d   :  { %1055 = vsyncpa [#allocation4], 1 }

</bundles_post_ra>
